<compile_context>
chip_gen: v7x
topology: tpu7x:2x2x1
jax: 0.10.0
libtpu: 0.0.40
codegen_flags: <defaults>
</compile_context>

<pallas_src>
import jax
import jax.numpy as jnp
from jax import lax
from jax.experimental import pallas as pl
from jax.experimental.pallas import tpu as pltpu

LANES = 128


def _round_up(x, m):
    return ((x + m - 1) // m) * m


def _build_gmm_kernel(n_samples, chunk, need_mask):
    """Kernel factory; n_samples / chunk / need_mask are static (baked in)."""

    def kernel(x_ref, lin_ref, quad_ref, c_ref, out_ref):
        """Per-tile partial of sum_n log( sum_i pi_i * N(x_n; mu_i, Sigma_i) ).

        x_ref    : (d, R, 128) VMEM  samples, coordinate-major, lane-dense
        lin_ref  : (k*d,)      SMEM  linear coefficients  P_i @ mu_i (flattened)
        quad_ref : (k*npair,)  SMEM  upper-tri quadratic coeffs, -0.5 folded in
        c_ref    : (k,)        SMEM  const_i + log(pi_i) - 0.5 mu_i^T P_i mu_i
        out_ref  : (1, 8, 128) VMEM  per-tile partial sums
        """
        d = x_ref.shape[0]
        R = x_ref.shape[1]
        k = c_ref.shape[0]
        npair = (d * (d + 1)) // 2
        num_chunks = R // chunk

        # ---- hoisted once per grid step (outside the chunk loop) ------------
        c_s = [c_ref[ci] for ci in range(k)]
        lin_s = [[lin_ref[ci * d + a] for a in range(d)] for ci in range(k)]
        quad_s = [[quad_ref[ci * npair + p] for p in range(npair)]
                  for ci in range(k)]

        tile_row0 = pl.program_id(0) * R

        def chunk_fn(ch, part):
            # One small chunk at a time keeps ~30 vregs live -> no spills.
            r0 = pl.multiple_of(ch * chunk, chunk)
            x = [x_ref[a, pl.ds(r0, chunk), :] for a in range(d)]  # (chunk,128)

            # Sample-only cross products, shared by every component.
            cross = []
            for a in range(d):
                for b in range(a, d):
                    cross.append(x[a] * x[b])

            # NOTE: no log-sum-exp stabilization, to match the reference module
            # exactly (both can underflow far from every component).
            mix = jnp.zeros((chunk, LANES), jnp.float32)
            for ci in range(k):                    # k small & static -> unrolled
                e = c_s[ci]
                for a in range(d):
                    e = e + lin_s[ci][a] * x[a]
                for p in range(npair):
                    e = e + quad_s[ci][p] * cross[p]
                mix = mix + jnp.exp(e)             # = pi_i * N(x; mu_i, Sigma_i)

            log_mix = jnp.log(mix)                 # fused into the chunk loop
            # TODO(synk): optional bf16 exp on v6e/v7x (2x EUP) once validated
            # against the 1e-4 tolerance; must stay f32 on v5e.

            if need_mask:
                # Zero contributions from zero-padded samples (index >= N).
                row = (lax.broadcasted_iota(jnp.int32, (chunk, LANES), 0)
                       + (tile_row0 + r0))
                lane = lax.broadcasted_iota(jnp.int32, (chunk, LANES), 1)
                log_mix = jnp.where(row * LANES + lane < n_samples,
                                    log_mix, 0.0)

            # Fold the chunk's sublane groups straight into the (8,128) partial.
            folded = log_mix[0:8, :]
            for g in range(1, chunk // 8):
                folded = folded + log_mix[g * 8:(g + 1) * 8, :]
            return part + folded

        part0 = jnp.zeros((8, LANES), jnp.float32)
        if num_chunks == 1:
            part = chunk_fn(0, part0)
        else:
            part = lax.fori_loop(0, num_chunks, chunk_fn, part0,
                                 unroll=(num_chunks <= 4))
        out_ref[0] = part

    return kernel


def _select_rows_per_tile(n_rows, max_rows_per_tile):
    """Rows (of 128 samples each) per grid step.

    * No divisor-of-n_rows requirement: the last tile is padded & masked, so
      awkward n_rows cannot silently degrade to 8-row tiles.
    * When everything would fit in one tile, split in two so v7x's second
      TensorCore gets work (the grid axis is "parallel").
    * Multiples of 32 so the in-kernel chunk loop uses 32-row chunks.
    """
    cap = max(32, (max_rows_per_tile // 32) * 32)
    m8 = _round_up(n_rows, 8)
    if m8 <= 32:
        return m8
    if m8 <= cap:
        return min(cap, max(32, _round_up((n_rows + 1) // 2, 32)))
    return cap


def prepare_samples(X, *, max_rows_per_tile=1024):
    """One-time lane-dense layout (d, rows, 128); hoist out of the SGD loop."""
    N, d = X.shape
    n_rows = pl.cdiv(N, LANES)
    R = _select_rows_per_tile(n_rows, max_rows_per_tile)
    num_tiles = pl.cdiv(n_rows, R)
    padded_rows = num_tiles * R
    xt = X.T.astype(jnp.float32)                       # (d, N)
    pad = padded_rows * LANES - N
    if pad:
        xt = jnp.pad(xt, ((0, 0), (0, pad)))           # zero-padded, masked later
    x3 = xt.reshape(d, padded_rows, LANES)
    return x3, N, R


def gmm_neg_log_like_prepared(x3, n_samples, rows_per_tile,
                              mus, pi_params, sigma_params):
    """Pallas implementation of GmmSgd.forward on pre-laid-out samples."""
    d, padded_rows, lanes = x3.shape
    assert lanes == LANES
    R = rows_per_tile
    num_tiles = padded_rows // R
    k = mus.shape[0]

    # ---- tiny per-component precomputation (k x d x d, negligible work) ----
    f32 = jnp.float32
    pis = jax.nn.softmax(pi_params.astype(f32))                      # (k,)
    sig = sigma_params.astype(f32)
    cov = jnp.einsum("kij,klj->kil", sig, sig)                       # Sigma_i
    prec = jnp.linalg.inv(cov)                                       # P_i
    _, logdet = jnp.linalg.slogdet(cov)
    const = -0.5 * (d * jnp.log(2.0 * jnp.pi) + logdet)              # (k,)

    mus32 = mus.astype(f32)
    lin = jnp.einsum("kij,kj->ki", prec, mus32)                      # P_i mu_i
    mPm = jnp.einsum("ki,ki->k", lin, mus32)                         # mu^T P mu
    c = const + jnp.log(pis) - 0.5 * mPm                             # (k,)

    # Upper-triangle quadratic coeffs with -0.5 folded in (off-diag doubled).
    quad_cols = []
    for a in range(d):
        for b in range(a, d):
            if a == b:
                quad_cols.append(-0.5 * prec[:, a, b])
            else:
                quad_cols.append(-0.5 * (prec[:, a, b] + prec[:, b, a]))
    quad = jnp.stack(quad_cols, axis=1)                              # (k, npair)
    npair = quad.shape[1]

    chunk = 32 if R % 32 == 0 else (16 if R % 16 == 0 else 8)
    need_mask = (padded_rows * LANES != n_samples)

    kernel = _build_gmm_kernel(n_samples, chunk, need_mask)

    partials = pl.pallas_call(
        kernel,
        out_shape=jax.ShapeDtypeStruct((num_tiles, 8, LANES), f32),
        grid=(num_tiles,),
        in_specs=[
            pl.BlockSpec((d, R, LANES), lambda i: (0, i, 0)),
            pl.BlockSpec(memory_space=pltpu.MemorySpace.SMEM),
            pl.BlockSpec(memory_space=pltpu.MemorySpace.SMEM),
            pl.BlockSpec(memory_space=pltpu.MemorySpace.SMEM),
        ],
        out_specs=pl.BlockSpec((1, 8, LANES), lambda i: (i, 0, 0)),
        compiler_params=pltpu.CompilerParams(dimension_semantics=("parallel",)),
    )(
        x3,
        lin.reshape(k * d),
        quad.reshape(k * npair),
        c,
    )

    return -(jnp.sum(partials) / n_samples)


def gmm_neg_log_like(X, mus, pi_params, sigma_params, *, max_rows_per_tile=1024):
    """Convenience wrapper; for SGD loops call prepare_samples() once instead."""
    x3, n, R = prepare_samples(X, max_rows_per_tile=max_rows_per_tile)
    return gmm_neg_log_like_prepared(x3, n, R, mus, pi_params, sigma_params)


def _reference_nll(X, mus, pi_params, sigma_params):
    """Pure-JAX reference matching GmmSgd.forward."""
    N, d = X.shape
    pis = jax.nn.softmax(pi_params)
    cov = jnp.einsum("kij,klj->kil", sigma_params, sigma_params)
    prec = jnp.linalg.inv(cov)
    _, logdet = jnp.linalg.slogdet(cov)
    diff = X[:, None, :] - mus[None, :, :]                            # (N, k, d)
    q = jnp.einsum("nki,kij,nkj->nk", diff, prec, diff)               # (N, k)
    logp = -0.5 * (d * jnp.log(2.0 * jnp.pi) + logdet)[None, :] - 0.5 * q
    dens = jnp.sum(jnp.exp(logp) * pis[None, :], axis=1)
    return -jnp.mean(jnp.log(dens))


if __name__ == "__main__":
    k, d, N = 10, 2, 1000   # matches the original script (N need not be 1024-aligned)

    key = jax.random.PRNGKey(0)
    k_mu, k_x = jax.random.split(key)

    # Deterministic parameter init mirroring GmmSgd.__init__:
    mus = jax.random.normal(k_mu, (k, d), dtype=jnp.float32)          # randn(k, d)
    pi_params = jnp.ones((k,), dtype=jnp.float32)                     # ones(k)
    sigma_params = jnp.tile(jnp.eye(d, dtype=jnp.float32)[None], (k, 1, 1))

    X = jax.random.normal(k_x, (N, d), dtype=jnp.float32)

    # Lane-dense layout is prepared once (hoist out of an SGD loop; X is reused).
    x3, n_samples, rows_per_tile = prepare_samples(X)
    nll = gmm_neg_log_like_prepared(x3, n_samples, rows_per_tile,
                                    mus, pi_params, sigma_params)
    nll = jax.block_until_ready(nll)

    ref = _reference_nll(X, mus, pi_params, sigma_params)
    assert jnp.allclose(nll, ref, rtol=1e-4, atol=1e-4), (nll, ref)

    print("KERNEL_OK")
</pallas_src>

<mosaic_0001>
module attributes {stable_mosaic.version = 11 : i64} {
  func.func @kernel(%arg0: i32, %arg1: memref<2x8x128xf32, #tpu.memory_space<vmem>>, %arg2: memref<20xf32, #tpu.memory_space<smem>>, %arg3: memref<30xf32, #tpu.memory_space<smem>>, %arg4: memref<10xf32, #tpu.memory_space<smem>>, %arg5: memref<1x8x128xf32, #tpu.memory_space<vmem>>) attributes {dimension_semantics = [#tpu.dimension_semantics<parallel>], iteration_bounds = array<i64: 1>, scalar_prefetch = 0 : i64, scratch_operands = 0 : i64, tpu.core_type = #tpu.core_type<tc>, window_params = [{transform_indices = @transform_0, window_bounds = array<i64: 2, 8, 128>}, {transform_indices = @transform_1, window_bounds = array<i64: 20>}, {transform_indices = @transform_2, window_bounds = array<i64: 30>}, {transform_indices = @transform_3, window_bounds = array<i64: 10>}, {transform_indices = @transform_4, window_bounds = array<i64: 1, 8, 128>}]} {
    %c0 = arith.constant 0 : index
    %0 = memref.load %arg4[%c0] : memref<10xf32, #tpu.memory_space<smem>>
    %c1 = arith.constant 1 : index
    %1 = memref.load %arg4[%c1] : memref<10xf32, #tpu.memory_space<smem>>
    %c2 = arith.constant 2 : index
    %2 = memref.load %arg4[%c2] : memref<10xf32, #tpu.memory_space<smem>>
    %c3 = arith.constant 3 : index
    %3 = memref.load %arg4[%c3] : memref<10xf32, #tpu.memory_space<smem>>
    %c4 = arith.constant 4 : index
    %4 = memref.load %arg4[%c4] : memref<10xf32, #tpu.memory_space<smem>>
    %c5 = arith.constant 5 : index
    %5 = memref.load %arg4[%c5] : memref<10xf32, #tpu.memory_space<smem>>
    %c6 = arith.constant 6 : index
    %6 = memref.load %arg4[%c6] : memref<10xf32, #tpu.memory_space<smem>>
    %c7 = arith.constant 7 : index
    %7 = memref.load %arg4[%c7] : memref<10xf32, #tpu.memory_space<smem>>
    %c8 = arith.constant 8 : index
    %8 = memref.load %arg4[%c8] : memref<10xf32, #tpu.memory_space<smem>>
    %c9 = arith.constant 9 : index
    %9 = memref.load %arg4[%c9] : memref<10xf32, #tpu.memory_space<smem>>
    %c0_0 = arith.constant 0 : index
    %10 = memref.load %arg2[%c0_0] : memref<20xf32, #tpu.memory_space<smem>>
    %c1_1 = arith.constant 1 : index
    %11 = memref.load %arg2[%c1_1] : memref<20xf32, #tpu.memory_space<smem>>
    %c2_2 = arith.constant 2 : index
    %12 = memref.load %arg2[%c2_2] : memref<20xf32, #tpu.memory_space<smem>>
    %c3_3 = arith.constant 3 : index
    %13 = memref.load %arg2[%c3_3] : memref<20xf32, #tpu.memory_space<smem>>
    %c4_4 = arith.constant 4 : index
    %14 = memref.load %arg2[%c4_4] : memref<20xf32, #tpu.memory_space<smem>>
    %c5_5 = arith.constant 5 : index
    %15 = memref.load %arg2[%c5_5] : memref<20xf32, #tpu.memory_space<smem>>
    %c6_6 = arith.constant 6 : index
    %16 = memref.load %arg2[%c6_6] : memref<20xf32, #tpu.memory_space<smem>>
    %c7_7 = arith.constant 7 : index
    %17 = memref.load %arg2[%c7_7] : memref<20xf32, #tpu.memory_space<smem>>
    %c8_8 = arith.constant 8 : index
    %18 = memref.load %arg2[%c8_8] : memref<20xf32, #tpu.memory_space<smem>>
    %c9_9 = arith.constant 9 : index
    %19 = memref.load %arg2[%c9_9] : memref<20xf32, #tpu.memory_space<smem>>
    %c10 = arith.constant 10 : index
    %20 = memref.load %arg2[%c10] : memref<20xf32, #tpu.memory_space<smem>>
    %c11 = arith.constant 11 : index
    %21 = memref.load %arg2[%c11] : memref<20xf32, #tpu.memory_space<smem>>
    %c12 = arith.constant 12 : index
    %22 = memref.load %arg2[%c12] : memref<20xf32, #tpu.memory_space<smem>>
    %c13 = arith.constant 13 : index
    %23 = memref.load %arg2[%c13] : memref<20xf32, #tpu.memory_space<smem>>
    %c14 = arith.constant 14 : index
    %24 = memref.load %arg2[%c14] : memref<20xf32, #tpu.memory_space<smem>>
    %c15 = arith.constant 15 : index
    %25 = memref.load %arg2[%c15] : memref<20xf32, #tpu.memory_space<smem>>
    %c16 = arith.constant 16 : index
    %26 = memref.load %arg2[%c16] : memref<20xf32, #tpu.memory_space<smem>>
    %c17 = arith.constant 17 : index
    %27 = memref.load %arg2[%c17] : memref<20xf32, #tpu.memory_space<smem>>
    %c18 = arith.constant 18 : index
    %28 = memref.load %arg2[%c18] : memref<20xf32, #tpu.memory_space<smem>>
    %c19 = arith.constant 19 : index
    %29 = memref.load %arg2[%c19] : memref<20xf32, #tpu.memory_space<smem>>
    %c0_10 = arith.constant 0 : index
    %30 = memref.load %arg3[%c0_10] : memref<30xf32, #tpu.memory_space<smem>>
    %c1_11 = arith.constant 1 : index
    %31 = memref.load %arg3[%c1_11] : memref<30xf32, #tpu.memory_space<smem>>
    %c2_12 = arith.constant 2 : index
    %32 = memref.load %arg3[%c2_12] : memref<30xf32, #tpu.memory_space<smem>>
    %c3_13 = arith.constant 3 : index
    %33 = memref.load %arg3[%c3_13] : memref<30xf32, #tpu.memory_space<smem>>
    %c4_14 = arith.constant 4 : index
    %34 = memref.load %arg3[%c4_14] : memref<30xf32, #tpu.memory_space<smem>>
    %c5_15 = arith.constant 5 : index
    %35 = memref.load %arg3[%c5_15] : memref<30xf32, #tpu.memory_space<smem>>
    %c6_16 = arith.constant 6 : index
    %36 = memref.load %arg3[%c6_16] : memref<30xf32, #tpu.memory_space<smem>>
    %c7_17 = arith.constant 7 : index
    %37 = memref.load %arg3[%c7_17] : memref<30xf32, #tpu.memory_space<smem>>
    %c8_18 = arith.constant 8 : index
    %38 = memref.load %arg3[%c8_18] : memref<30xf32, #tpu.memory_space<smem>>
    %c9_19 = arith.constant 9 : index
    %39 = memref.load %arg3[%c9_19] : memref<30xf32, #tpu.memory_space<smem>>
    %c10_20 = arith.constant 10 : index
    %40 = memref.load %arg3[%c10_20] : memref<30xf32, #tpu.memory_space<smem>>
    %c11_21 = arith.constant 11 : index
    %41 = memref.load %arg3[%c11_21] : memref<30xf32, #tpu.memory_space<smem>>
    %c12_22 = arith.constant 12 : index
    %42 = memref.load %arg3[%c12_22] : memref<30xf32, #tpu.memory_space<smem>>
    %c13_23 = arith.constant 13 : index
    %43 = memref.load %arg3[%c13_23] : memref<30xf32, #tpu.memory_space<smem>>
    %c14_24 = arith.constant 14 : index
    %44 = memref.load %arg3[%c14_24] : memref<30xf32, #tpu.memory_space<smem>>
    %c15_25 = arith.constant 15 : index
    %45 = memref.load %arg3[%c15_25] : memref<30xf32, #tpu.memory_space<smem>>
    %c16_26 = arith.constant 16 : index
    %46 = memref.load %arg3[%c16_26] : memref<30xf32, #tpu.memory_space<smem>>
    %c17_27 = arith.constant 17 : index
    %47 = memref.load %arg3[%c17_27] : memref<30xf32, #tpu.memory_space<smem>>
    %c18_28 = arith.constant 18 : index
    %48 = memref.load %arg3[%c18_28] : memref<30xf32, #tpu.memory_space<smem>>
    %c19_29 = arith.constant 19 : index
    %49 = memref.load %arg3[%c19_29] : memref<30xf32, #tpu.memory_space<smem>>
    %c20 = arith.constant 20 : index
    %50 = memref.load %arg3[%c20] : memref<30xf32, #tpu.memory_space<smem>>
    %c21 = arith.constant 21 : index
    %51 = memref.load %arg3[%c21] : memref<30xf32, #tpu.memory_space<smem>>
    %c22 = arith.constant 22 : index
    %52 = memref.load %arg3[%c22] : memref<30xf32, #tpu.memory_space<smem>>
    %c23 = arith.constant 23 : index
    %53 = memref.load %arg3[%c23] : memref<30xf32, #tpu.memory_space<smem>>
    %c24 = arith.constant 24 : index
    %54 = memref.load %arg3[%c24] : memref<30xf32, #tpu.memory_space<smem>>
    %c25 = arith.constant 25 : index
    %55 = memref.load %arg3[%c25] : memref<30xf32, #tpu.memory_space<smem>>
    %c26 = arith.constant 26 : index
    %56 = memref.load %arg3[%c26] : memref<30xf32, #tpu.memory_space<smem>>
    %c27 = arith.constant 27 : index
    %57 = memref.load %arg3[%c27] : memref<30xf32, #tpu.memory_space<smem>>
    %c28 = arith.constant 28 : index
    %58 = memref.load %arg3[%c28] : memref<30xf32, #tpu.memory_space<smem>>
    %c29 = arith.constant 29 : index
    %59 = memref.load %arg3[%c29] : memref<30xf32, #tpu.memory_space<smem>>
    %c8_i32 = arith.constant 8 : i32
    %60 = arith.muli %arg0, %c8_i32 : i32
    %cst = arith.constant 0.000000e+00 : f32
    %61 = vector.broadcast %cst : f32 to vector<8x128xf32>
    %c0_i32 = arith.constant 0 : i32
    %62 = tpu.assume_multiple %c0_i32, 8 : i32
    %c0_30 = arith.constant 0 : index
    %63 = arith.index_cast %62 : i32 to index
    %c0_31 = arith.constant 0 : index
    %64 = vector.load %arg1[%c0_30, %63, %c0_31] : memref<2x8x128xf32, #tpu.memory_space<vmem>>, vector<1x8x128xf32>
    %65 = vector.shape_cast %64 : vector<1x8x128xf32> to vector<8x128xf32>
    %c1_32 = arith.constant 1 : index
    %66 = arith.index_cast %62 : i32 to index
    %c0_33 = arith.constant 0 : index
    %67 = vector.load %arg1[%c1_32, %66, %c0_33] : memref<2x8x128xf32, #tpu.memory_space<vmem>>, vector<1x8x128xf32>
    %68 = vector.shape_cast %67 : vector<1x8x128xf32> to vector<8x128xf32>
    %69 = arith.mulf %65, %65 : vector<8x128xf32>
    %70 = arith.mulf %65, %68 : vector<8x128xf32>
    %71 = arith.mulf %68, %68 : vector<8x128xf32>
    %cst_34 = arith.constant 0.000000e+00 : f32
    %72 = vector.broadcast %cst_34 : f32 to vector<8x128xf32>
    %73 = vector.broadcast %10 : f32 to vector<8x128xf32>
    %74 = arith.mulf %73, %65 : vector<8x128xf32>
    %75 = vector.broadcast %0 : f32 to vector<8x128xf32>
    %76 = arith.addf %75, %74 : vector<8x128xf32>
    %77 = vector.broadcast %11 : f32 to vector<8x128xf32>
    %78 = arith.mulf %77, %68 : vector<8x128xf32>
    %79 = arith.addf %76, %78 : vector<8x128xf32>
    %80 = vector.broadcast %30 : f32 to vector<8x128xf32>
    %81 = arith.mulf %80, %69 : vector<8x128xf32>
    %82 = arith.addf %79, %81 : vector<8x128xf32>
    %83 = vector.broadcast %31 : f32 to vector<8x128xf32>
    %84 = arith.mulf %83, %70 : vector<8x128xf32>
    %85 = arith.addf %82, %84 : vector<8x128xf32>
    %86 = vector.broadcast %32 : f32 to vector<8x128xf32>
    %87 = arith.mulf %86, %71 : vector<8x128xf32>
    %88 = arith.addf %85, %87 : vector<8x128xf32>
    %89 = math.exp %88 : vector<8x128xf32>
    %90 = arith.addf %72, %89 : vector<8x128xf32>
    %91 = vector.broadcast %12 : f32 to vector<8x128xf32>
    %92 = arith.mulf %91, %65 : vector<8x128xf32>
    %93 = vector.broadcast %1 : f32 to vector<8x128xf32>
    %94 = arith.addf %93, %92 : vector<8x128xf32>
    %95 = vector.broadcast %13 : f32 to vector<8x128xf32>
    %96 = arith.mulf %95, %68 : vector<8x128xf32>
    %97 = arith.addf %94, %96 : vector<8x128xf32>
    %98 = vector.broadcast %33 : f32 to vector<8x128xf32>
    %99 = arith.mulf %98, %69 : vector<8x128xf32>
    %100 = arith.addf %97, %99 : vector<8x128xf32>
    %101 = vector.broadcast %34 : f32 to vector<8x128xf32>
    %102 = arith.mulf %101, %70 : vector<8x128xf32>
    %103 = arith.addf %100, %102 : vector<8x128xf32>
    %104 = vector.broadcast %35 : f32 to vector<8x128xf32>
    %105 = arith.mulf %104, %71 : vector<8x128xf32>
    %106 = arith.addf %103, %105 : vector<8x128xf32>
    %107 = math.exp %106 : vector<8x128xf32>
    %108 = arith.addf %90, %107 : vector<8x128xf32>
    %109 = vector.broadcast %14 : f32 to vector<8x128xf32>
    %110 = arith.mulf %109, %65 : vector<8x128xf32>
    %111 = vector.broadcast %2 : f32 to vector<8x128xf32>
    %112 = arith.addf %111, %110 : vector<8x128xf32>
    %113 = vector.broadcast %15 : f32 to vector<8x128xf32>
    %114 = arith.mulf %113, %68 : vector<8x128xf32>
    %115 = arith.addf %112, %114 : vector<8x128xf32>
    %116 = vector.broadcast %36 : f32 to vector<8x128xf32>
    %117 = arith.mulf %116, %69 : vector<8x128xf32>
    %118 = arith.addf %115, %117 : vector<8x128xf32>
    %119 = vector.broadcast %37 : f32 to vector<8x128xf32>
    %120 = arith.mulf %119, %70 : vector<8x128xf32>
    %121 = arith.addf %118, %120 : vector<8x128xf32>
    %122 = vector.broadcast %38 : f32 to vector<8x128xf32>
    %123 = arith.mulf %122, %71 : vector<8x128xf32>
    %124 = arith.addf %121, %123 : vector<8x128xf32>
    %125 = math.exp %124 : vector<8x128xf32>
    %126 = arith.addf %108, %125 : vector<8x128xf32>
    %127 = vector.broadcast %16 : f32 to vector<8x128xf32>
    %128 = arith.mulf %127, %65 : vector<8x128xf32>
    %129 = vector.broadcast %3 : f32 to vector<8x128xf32>
    %130 = arith.addf %129, %128 : vector<8x128xf32>
    %131 = vector.broadcast %17 : f32 to vector<8x128xf32>
    %132 = arith.mulf %131, %68 : vector<8x128xf32>
    %133 = arith.addf %130, %132 : vector<8x128xf32>
    %134 = vector.broadcast %39 : f32 to vector<8x128xf32>
    %135 = arith.mulf %134, %69 : vector<8x128xf32>
    %136 = arith.addf %133, %135 : vector<8x128xf32>
    %137 = vector.broadcast %40 : f32 to vector<8x128xf32>
    %138 = arith.mulf %137, %70 : vector<8x128xf32>
    %139 = arith.addf %136, %138 : vector<8x128xf32>
    %140 = vector.broadcast %41 : f32 to vector<8x128xf32>
    %141 = arith.mulf %140, %71 : vector<8x128xf32>
    %142 = arith.addf %139, %141 : vector<8x128xf32>
    %143 = math.exp %142 : vector<8x128xf32>
    %144 = arith.addf %126, %143 : vector<8x128xf32>
    %145 = vector.broadcast %18 : f32 to vector<8x128xf32>
    %146 = arith.mulf %145, %65 : vector<8x128xf32>
    %147 = vector.broadcast %4 : f32 to vector<8x128xf32>
    %148 = arith.addf %147, %146 : vector<8x128xf32>
    %149 = vector.broadcast %19 : f32 to vector<8x128xf32>
    %150 = arith.mulf %149, %68 : vector<8x128xf32>
    %151 = arith.addf %148, %150 : vector<8x128xf32>
    %152 = vector.broadcast %42 : f32 to vector<8x128xf32>
    %153 = arith.mulf %152, %69 : vector<8x128xf32>
    %154 = arith.addf %151, %153 : vector<8x128xf32>
    %155 = vector.broadcast %43 : f32 to vector<8x128xf32>
    %156 = arith.mulf %155, %70 : vector<8x128xf32>
    %157 = arith.addf %154, %156 : vector<8x128xf32>
    %158 = vector.broadcast %44 : f32 to vector<8x128xf32>
    %159 = arith.mulf %158, %71 : vector<8x128xf32>
    %160 = arith.addf %157, %159 : vector<8x128xf32>
    %161 = math.exp %160 : vector<8x128xf32>
    %162 = arith.addf %144, %161 : vector<8x128xf32>
    %163 = vector.broadcast %20 : f32 to vector<8x128xf32>
    %164 = arith.mulf %163, %65 : vector<8x128xf32>
    %165 = vector.broadcast %5 : f32 to vector<8x128xf32>
    %166 = arith.addf %165, %164 : vector<8x128xf32>
    %167 = vector.broadcast %21 : f32 to vector<8x128xf32>
    %168 = arith.mulf %167, %68 : vector<8x128xf32>
    %169 = arith.addf %166, %168 : vector<8x128xf32>
    %170 = vector.broadcast %45 : f32 to vector<8x128xf32>
    %171 = arith.mulf %170, %69 : vector<8x128xf32>
    %172 = arith.addf %169, %171 : vector<8x128xf32>
    %173 = vector.broadcast %46 : f32 to vector<8x128xf32>
    %174 = arith.mulf %173, %70 : vector<8x128xf32>
    %175 = arith.addf %172, %174 : vector<8x128xf32>
    %176 = vector.broadcast %47 : f32 to vector<8x128xf32>
    %177 = arith.mulf %176, %71 : vector<8x128xf32>
    %178 = arith.addf %175, %177 : vector<8x128xf32>
    %179 = math.exp %178 : vector<8x128xf32>
    %180 = arith.addf %162, %179 : vector<8x128xf32>
    %181 = vector.broadcast %22 : f32 to vector<8x128xf32>
    %182 = arith.mulf %181, %65 : vector<8x128xf32>
    %183 = vector.broadcast %6 : f32 to vector<8x128xf32>
    %184 = arith.addf %183, %182 : vector<8x128xf32>
    %185 = vector.broadcast %23 : f32 to vector<8x128xf32>
    %186 = arith.mulf %185, %68 : vector<8x128xf32>
    %187 = arith.addf %184, %186 : vector<8x128xf32>
    %188 = vector.broadcast %48 : f32 to vector<8x128xf32>
    %189 = arith.mulf %188, %69 : vector<8x128xf32>
    %190 = arith.addf %187, %189 : vector<8x128xf32>
    %191 = vector.broadcast %49 : f32 to vector<8x128xf32>
    %192 = arith.mulf %191, %70 : vector<8x128xf32>
    %193 = arith.addf %190, %192 : vector<8x128xf32>
    %194 = vector.broadcast %50 : f32 to vector<8x128xf32>
    %195 = arith.mulf %194, %71 : vector<8x128xf32>
    %196 = arith.addf %193, %195 : vector<8x128xf32>
    %197 = math.exp %196 : vector<8x128xf32>
    %198 = arith.addf %180, %197 : vector<8x128xf32>
    %199 = vector.broadcast %24 : f32 to vector<8x128xf32>
    %200 = arith.mulf %199, %65 : vector<8x128xf32>
    %201 = vector.broadcast %7 : f32 to vector<8x128xf32>
    %202 = arith.addf %201, %200 : vector<8x128xf32>
    %203 = vector.broadcast %25 : f32 to vector<8x128xf32>
    %204 = arith.mulf %203, %68 : vector<8x128xf32>
    %205 = arith.addf %202, %204 : vector<8x128xf32>
    %206 = vector.broadcast %51 : f32 to vector<8x128xf32>
    %207 = arith.mulf %206, %69 : vector<8x128xf32>
    %208 = arith.addf %205, %207 : vector<8x128xf32>
    %209 = vector.broadcast %52 : f32 to vector<8x128xf32>
    %210 = arith.mulf %209, %70 : vector<8x128xf32>
    %211 = arith.addf %208, %210 : vector<8x128xf32>
    %212 = vector.broadcast %53 : f32 to vector<8x128xf32>
    %213 = arith.mulf %212, %71 : vector<8x128xf32>
    %214 = arith.addf %211, %213 : vector<8x128xf32>
    %215 = math.exp %214 : vector<8x128xf32>
    %216 = arith.addf %198, %215 : vector<8x128xf32>
    %217 = vector.broadcast %26 : f32 to vector<8x128xf32>
    %218 = arith.mulf %217, %65 : vector<8x128xf32>
    %219 = vector.broadcast %8 : f32 to vector<8x128xf32>
    %220 = arith.addf %219, %218 : vector<8x128xf32>
    %221 = vector.broadcast %27 : f32 to vector<8x128xf32>
    %222 = arith.mulf %221, %68 : vector<8x128xf32>
    %223 = arith.addf %220, %222 : vector<8x128xf32>
    %224 = vector.broadcast %54 : f32 to vector<8x128xf32>
    %225 = arith.mulf %224, %69 : vector<8x128xf32>
    %226 = arith.addf %223, %225 : vector<8x128xf32>
    %227 = vector.broadcast %55 : f32 to vector<8x128xf32>
    %228 = arith.mulf %227, %70 : vector<8x128xf32>
    %229 = arith.addf %226, %228 : vector<8x128xf32>
    %230 = vector.broadcast %56 : f32 to vector<8x128xf32>
    %231 = arith.mulf %230, %71 : vector<8x128xf32>
    %232 = arith.addf %229, %231 : vector<8x128xf32>
    %233 = math.exp %232 : vector<8x128xf32>
    %234 = arith.addf %216, %233 : vector<8x128xf32>
    %235 = vector.broadcast %28 : f32 to vector<8x128xf32>
    %236 = arith.mulf %235, %65 : vector<8x128xf32>
    %237 = vector.broadcast %9 : f32 to vector<8x128xf32>
    %238 = arith.addf %237, %236 : vector<8x128xf32>
    %239 = vector.broadcast %29 : f32 to vector<8x128xf32>
    %240 = arith.mulf %239, %68 : vector<8x128xf32>
    %241 = arith.addf %238, %240 : vector<8x128xf32>
    %242 = vector.broadcast %57 : f32 to vector<8x128xf32>
    %243 = arith.mulf %242, %69 : vector<8x128xf32>
    %244 = arith.addf %241, %243 : vector<8x128xf32>
    %245 = vector.broadcast %58 : f32 to vector<8x128xf32>
    %246 = arith.mulf %245, %70 : vector<8x128xf32>
    %247 = arith.addf %244, %246 : vector<8x128xf32>
    %248 = vector.broadcast %59 : f32 to vector<8x128xf32>
    %249 = arith.mulf %248, %71 : vector<8x128xf32>
    %250 = arith.addf %247, %249 : vector<8x128xf32>
    %251 = math.exp %250 : vector<8x128xf32>
    %252 = arith.addf %234, %251 : vector<8x128xf32>
    %253 = math.log %252 : vector<8x128xf32>
    %254 = tpu.iota {dimensions = array<i32: 0>} : vector<8x128xi32>
    %255 = arith.addi %60, %62 : i32
    %256 = vector.broadcast %255 : i32 to vector<8x128xi32>
    %257 = arith.addi %254, %256 : vector<8x128xi32>
    %258 = tpu.iota {dimensions = array<i32: 1>} : vector<8x128xi32>
    %c128_i32 = arith.constant 128 : i32
    %259 = vector.broadcast %c128_i32 : i32 to vector<8x128xi32>
    %260 = arith.muli %257, %259 : vector<8x128xi32>
    %261 = arith.addi %260, %258 : vector<8x128xi32>
    %c1000_i32 = arith.constant 1000 : i32
    %262 = vector.broadcast %c1000_i32 : i32 to vector<8x128xi32>
    %263 = arith.cmpi slt, %261, %262 : vector<8x128xi32>
    %cst_35 = arith.constant 0.000000e+00 : f32
    %264 = vector.broadcast %cst_35 : f32 to vector<8x128xf32>
    %265 = arith.select %263, %253, %264 : vector<8x128xi1>, vector<8x128xf32>
    %266 = arith.addf %61, %265 : vector<8x128xf32>
    %c0_36 = arith.constant 0 : index
    %c0_37 = arith.constant 0 : index
    %c0_38 = arith.constant 0 : index
    %267 = vector.load %arg5[%c0_36, %c0_37, %c0_38] : memref<1x8x128xf32, #tpu.memory_space<vmem>>, vector<1x8x128xf32>
    %268 = vector.shape_cast %267 : vector<1x8x128xf32> to vector<8x128xf32>
    %269 = vector.shape_cast %266 : vector<8x128xf32> to vector<1x8x128xf32>
    tpu.vector_store %arg5[%c0_36, %c0_37, %c0_38], %269 {strides = array<i32>} : memref<1x8x128xf32, #tpu.memory_space<vmem>>, vector<1x8x128xf32>,
    return
  }
  func.func @transform_0(%arg0: i32) -> (i32, i32, i32) {
    %c0_i32 = arith.constant 0 : i32
    %c0_i32_0 = arith.constant 0 : i32
    %c0_i32_1 = arith.constant 0 : i32
    return %c0_i32, %arg0, %c0_i32_0 : i32, i32, i32
  }
  func.func @transform_1(%arg0: i32) -> i32 {
    %c0_i32 = arith.constant 0 : i32
    %c0_i32_0 = arith.constant 0 : i32
    return %c0_i32 : i32
  }
  func.func @transform_2(%arg0: i32) -> i32 {
    %c0_i32 = arith.constant 0 : i32
    %c0_i32_0 = arith.constant 0 : i32
    return %c0_i32 : i32
  }
  func.func @transform_3(%arg0: i32) -> i32 {
    %c0_i32 = arith.constant 0 : i32
    %c0_i32_0 = arith.constant 0 : i32
    return %c0_i32 : i32
  }
  func.func @transform_4(%arg0: i32) -> (i32, i32, i32) {
    %c0_i32 = arith.constant 0 : i32
    %c0_i32_0 = arith.constant 0 : i32
    %c0_i32_1 = arith.constant 0 : i32
    return %arg0, %c0_i32, %c0_i32_0 : i32, i32, i32
  }
}

</mosaic_0001>

<bundles_post_ra>
// kernel: tpu_custom_call.1
= control target key start
LH: loop header
LB: loop body
LE: loop exit
PB: predicated region body
PF: predicated region fallthrough
CT: control target
= control target key end

     0   :  { %9 = vsyncpa [#allocation3], 0  ;;  %s850_s0 = inlined_call_operand.hbm [shape: f32[2,8,128], index: 0, kind: input, shape index: {}]   ;;  %s851_s1 = inlined_call_operand.vmem [shape: f32[20], index: 1, kind: input, shape index: {}]   ;;  %s852_s2 = inlined_call_operand.vmem [shape: f32[30], index: 2, kind: input, shape index: {}]   ;;  %s853_s3 = inlined_call_operand.vmem [shape: f32[10], index: 3, kind: input, shape index: {}]   ;;  %s854_s4 = inlined_call_operand.hbm [shape: f32[1,8,128], index: 4, kind: output, shape index: {}]  }
   0x1   :  { %10 = vsyncpa [#allocation5], 0 }
   0x2   :  { %11 = vsyncpa [#allocation8], 0  ;;  %s41_s17 = sshll.u32 %s852_s2, 4  ;;  %s42_s17 = int_to_ptr.vmem [resolvable:$true] %s41_s17 }
   0x3   :  { %12 = vsyncpa [#allocation4], 0  ;;  %s445_s18 = scalar_lea.vmem %s42_s17, 16  ;;  %p450_p1 = scmp.lt.s32.totalorder %s42_s17, %s42_s17 }
   0x4   :  { %p446_p0 = scmp.ne.s32.totalorder %s42_s17, %s445_s18  ;;  %p451_p2 = scmp.lt.s32.totalorder %s445_s18, %s445_s18 }
   0x6   :  { %p452_p3 = por %p451_p2, %p450_p1 }
   0x8   :  { %p453_p4 = pnand %p452_p3, %p446_p0 }
   0xa   :  { %456 = shalt.err (!%p453_p4)
}
   0xb   :  { %s533_s19 = smov [#allocation7]   ;;  %s534_s20 = smov [#allocation2]  }
   0xc   :  { %44 = dma.vmem_to_smem %s42_s17, 16, %s533_s19, [#allocation8]  }
   0xd   :  { %s18_s21 = sshll.u32 %s534_s20, 4  ;;  %s457_s24 = scalar_lea.hbm %s850_s0, 256  ;;  %s19_s21 = int_to_ptr.vmem [resolvable:$true] %s18_s21 }
   0xe   :  { %p458_p5 = scmp.ne.s32.totalorder %s850_s0, %s457_s24  ;;  %p461_p6 = scmp.lt.u32.totalorder %s457_s24, %s850_s0 }
  0x10   :  { %p463_p7 = pnand %p461_p6, %p458_p5 }
  0x12   :  { %466 = shalt.err (!%p463_p7)
}
  0x13   :  { %s467_s28 = scalar_lea.vmem %s19_s21, 256  ;;  %p472_p9 = scmp.lt.s32.totalorder %s19_s21, %s19_s21 }
  0x14   :  { %p468_p8 = scmp.ne.s32.totalorder %s19_s21, %s467_s28  ;;  %p473_p10 = scmp.lt.s32.totalorder %s467_s28, %s467_s28 }
  0x16   :  { %p474_p11 = por %p473_p10, %p472_p9 }
  0x18   :  { %p475_p12 = pnand %p474_p11, %p468_p8 }
  0x1a   :  { %478 = shalt.err (!%p475_p12)
}
  0x1b   :  { %s535_s29 = smov 128   ;;  %s536_s30 = smov 8  }
  0x1c   :  { %24 = dma.hbm_to_vmem [thread:$0]  %s850_s0, 256, %s19_s21, [#allocation3], %s535_s29, %s535_s29, %s536_s30  }
  0x1d   :  { %s31_s9 = sshll.u32 %s851_s1, 4  ;;  %s51_s12 = sshll.u32 %s853_s3, 4  ;;  %s32_s9 = int_to_ptr.vmem [resolvable:$true] %s31_s9  ;;  %s52_s12 = int_to_ptr.vmem [resolvable:$true] %s51_s12 }
  0x1e   :  { %s479_s13 = scalar_lea.vmem %s32_s9, 16  ;;  %p484_p0 = scmp.lt.s32.totalorder %s32_s9, %s32_s9 }
  0x1f   :  { %p480_p13 = scmp.ne.s32.totalorder %s32_s9, %s479_s13  ;;  %p485_p1 = scmp.lt.s32.totalorder %s479_s13, %s479_s13 }
  0x21   :  { %p486_p2 = por %p485_p1, %p484_p0 }
  0x23   :  { %p487_p3 = pnand %p486_p2, %p480_p13 }
  0x25   :  { %490 = shalt.err (!%p487_p3)
}
  0x26   :  { %s537_s14 = smov [#allocation6]   ;;  %s491_s0 = scalar_lea.vmem %s52_s12, 16 }
  0x27   :  { %34 = dma.vmem_to_smem %s32_s9, 16, %s537_s14, [#allocation5]  }
  0x28   :  { %p492_p4 = scmp.ne.s32.totalorder %s52_s12, %s491_s0  ;;  %p496_p5 = scmp.lt.s32.totalorder %s52_s12, %s52_s12 }
  0x29   :  { %p497_p6 = scmp.lt.s32.totalorder %s491_s0, %s491_s0 }
  0x2b   :  { %p498_p7 = por %p497_p6, %p496_p5 }
  0x2d   :  { %p499_p8 = pnand %p498_p7, %p492_p4 }
  0x2f   :  { %502 = shalt.err (!%p499_p8)
}
  0x30   :  { %s538_s1 = smov [#allocation9]  }
  0x31   :  { %54 = dma.vmem_to_smem %s52_s12, 16, %s538_s1, [#allocation8]  }
  0x32   :  { %525 = dma.done.wait [#allocation3], 256  }
  0x33   :  { %526 = vsyncadd [#allocation3], 4294967040 }
  0x34   :  { %527 = dma.done.wait [#allocation5], 16  }
  0x35   :  { %528 = vsyncadd [#allocation5], 4294967280 }
  0x36   :  { %529 = dma.done.wait [#allocation8], 32  }
  0x37   :  { %530 = vsyncadd [#allocation8], 4294967264 }
  0x38   :  { %67 = sfence }
  0x39   :  { %s586_s3 = sld [smem:[#allocation9]]  ;;  %s588_s15 = sld [smem:[#allocation9 + $0x1]]  ;;  %v610_v0 = vld [vmem:[#allocation2] sm:$0xff]  ;;  %v616_v1 = vld [vmem:[#allocation2 + $0x8] sm:$0xff] }
  0x3a   :  { %s590_s16 = sld [smem:[#allocation9 + $0x2]]  ;;  %s592_s17 = sld [smem:[#allocation9 + $0x3]]  ;;  %v620_v2 = vmul.f32 %v610_v0, %v610_v0  ;;  %v628_v3 = vmul.f32 %v616_v1, %v610_v0  ;;  %v632_v4 = vmul.f32 %v616_v1, %v616_v1 }
  0x3b   :  { %s594_s18 = sld [smem:[#allocation9 + $0x4]]  ;;  %s596_s19 = sld [smem:[#allocation9 + $0x5]] }
  0x3c   :  { %s598_s20 = sld [smem:[#allocation9 + $0x6]]  ;;  %s600_s21 = sld [smem:[#allocation9 + $0x7]] }
  0x3d   :  { %s78_s22 = sld [smem:[#allocation6]]  ;;  %s368_s23 = sld [smem:[#allocation6 + $0x1]] }
  0x3e   :  { %s602_s24 = sld [smem:[#allocation6 + $0x2]]  ;;  %s604_s25 = sld [smem:[#allocation6 + $0x3]] }
  0x3f   :  { %s606_s2 = sld [smem:[#allocation6 + $0x4]]  ;;  %s608_s26 = sld [smem:[#allocation6 + $0x5]]  ;;  %v138_v5 = vstv %s586_s3  ;;  %v157_v6 = vstv %s588_s15 }
  0x40   :  { %s612_s27 = sld [smem:[#allocation6 + $0x6]]  ;;  %s614_s28 = sld [smem:[#allocation6 + $0x7]]  ;;  %v176_v7 = vstv %s590_s16  ;;  %v195_v8 = vstv %s592_s17 }
  0x41   :  { %s622_s29 = sld [smem:[#allocation6 + $0x8]]  ;;  %s624_s30 = sld [smem:[#allocation6 + $0x9]]  ;;  %v214_v9 = vstv %s594_s18  ;;  %v233_v10 = vstv %s596_s19 }
  0x42   :  { %s636_s5 = sld [smem:[#allocation6 + $0xa]]  ;;  %s638_s6 = sld [smem:[#allocation6 + $0xb]]  ;;  %v252_v13 = vstv %s598_s20  ;;  %v271_v14 = vstv %s600_s21 }
  0x43   :  { %s644_s7 = sld [smem:[#allocation6 + $0xc]]  ;;  %s646_s8 = sld [smem:[#allocation6 + $0xd]]  ;;  %v136_v11 = vstv %s78_s22  ;;  %v140_v12 = vstv %s368_s23 }
  0x44   :  { %v137_v15 = vmul.f32 %v136_v11, %v610_v0  ;;  %v141_v16 = vmul.f32 %v140_v12, %v616_v1  ;;  %v155_v17 = vstv %s602_s24  ;;  %v159_v18 = vstv %s604_s25  ;;  %s654_s9 = sld [smem:[#allocation6 + $0xe]]  ;;  %s663_s10 = sld [smem:[#allocation7]] }
  0x45   :  { %v156_v19 = vmul.f32 %v155_v17, %v610_v0  ;;  %v160_v20 = vmul.f32 %v159_v18, %v616_v1  ;;  %v174_v21 = vstv %s606_s2  ;;  %v178_v22 = vstv %s608_s26  ;;  %s665_s11 = sld [smem:[#allocation7 + $0x1]]  ;;  %s670_s12 = sld [smem:[#allocation7 + $0x2]] }
  0x46   :  { %v139_v23 = vadd.f32 %v138_v5, %v137_v15  ;;  %v175_v24 = vmul.f32 %v174_v21, %v610_v0  ;;  %v179_v25 = vmul.f32 %v178_v22, %v616_v1  ;;  %v193_v26 = vstv %s612_s27  ;;  %s672_s13 = sld [smem:[#allocation7 + $0x3]]  ;;  %s676_s14 = sld [smem:[#allocation7 + $0x4]] }
  0x47   :  { %v158_v27 = vadd.f32 %v157_v6, %v156_v19  ;;  %v194_v28 = vmul.f32 %v193_v26, %v610_v0  ;;  %v197_v29 = vstv %s614_s28  ;;  %v212_v30 = vstv %s622_s29  ;;  %s678_s0 = sld [smem:[#allocation7 + $0x5]]  ;;  %s682_s1 = sld [smem:[#allocation7 + $0x6]] }
  0x48   :  { %v142_v31 = vadd.f32 %v141_v16, %v139_v23  ;;  %v177_v32 = vadd.f32 %v176_v7, %v175_v24  ;;  %v198_v33 = vmul.f32 %v197_v29, %v616_v1  ;;  %v213_v34 = vmul.f32 %v212_v30, %v610_v0  ;;  %s684_s3 = sld [smem:[#allocation7 + $0x7]]  ;;  %s688_s15 = sld [smem:[#allocation7 + $0x8]] }
  0x49   :  { %v161_v35 = vadd.f32 %v160_v20, %v158_v27  ;;  %v196_v36 = vadd.f32 %v195_v8, %v194_v28  ;;  %v216_v37 = vstv %s624_s30  ;;  %v231_v38 = vstv %s636_s5  ;;  %s690_s16 = sld [smem:[#allocation7 + $0x9]]  ;;  %s695_s17 = sld [smem:[#allocation7 + $0xa]] }
  0x4a   :  { %v180_v39 = vadd.f32 %v179_v25, %v177_v32  ;;  %v215_v40 = vadd.f32 %v214_v9, %v213_v34  ;;  %v217_v41 = vmul.f32 %v216_v37, %v616_v1  ;;  %v232_v42 = vmul.f32 %v231_v38, %v610_v0  ;;  %s697_s18 = sld [smem:[#allocation7 + $0xb]]  ;;  %s703_s19 = sld [smem:[#allocation7 + $0xc]] }
  0x4b   :  { %v199_v43 = vadd.f32 %v198_v33, %v196_v36  ;;  %v235_v44 = vstv %s638_s6  ;;  %v250_v45 = vstv %s644_s7  ;;  %v254_v46 = vstv %s646_s8  ;;  %s711_s22 = sld [smem:[#allocation7 + $0xd]]  ;;  %s713_s23 = sld [smem:[#allocation7 + $0xe]] }
  0x4c   :  { %v218_v47 = vadd.f32 %v217_v41, %v215_v40  ;;  %v234_v48 = vadd.f32 %v233_v10, %v232_v42  ;;  %v236_v49 = vmul.f32 %v235_v44, %v616_v1  ;;  %v701_v50 = vmul.f32 %v250_v45, %v610_v0  ;;  %s726_s24 = sld [smem:[#allocation7 + $0xf]]  ;;  %s731_s25 = sld [smem:[#allocation7 + $0x10]] }
  0x4d   :  { %v143_v51 = vstv %s663_s10  ;;  %v146_v52 = vstv %s665_s11  ;;  %v708_v53 = vmul.f32 %v254_v46, %v616_v1  ;;  %v269_v54 = vstv %s654_s9  ;;  %s733_s2 = sld [smem:[#allocation7 + $0x11]]  ;;  %s740_s26 = sld [smem:[#allocation7 + $0x12]] }
  0x4e   :  { %v144_v55 = vmul.f32 %v143_v51, %v620_v2  ;;  %v147_v56 = vmul.f32 %v146_v52, %v628_v3  ;;  %v149_v57 = vstv %s670_s12  ;;  %v162_v58 = vstv %s672_s13  ;;  %s745_s27 = sld [smem:[#allocation7 + $0x13]]  ;;  %s747_s28 = sld [smem:[#allocation7 + $0x14]] }
  0x4f   :  { %v150_v59 = vmul.f32 %v149_v57, %v632_v4  ;;  %v163_v60 = vmul.f32 %v162_v58, %v620_v2  ;;  %v165_v61 = vstv %s676_s14  ;;  %v168_v62 = vstv %s678_s0  ;;  %s753_s29 = sld [smem:[#allocation6 + $0xf]]  ;;  %s755_s30 = sld [smem:[#allocation7 + $0x15]] }
  0x50   :  { %v145_v63 = vadd.f32 %v144_v55, %v142_v31  ;;  %v166_v5 = vmul.f32 %v165_v61, %v628_v3  ;;  %v169_v6 = vmul.f32 %v168_v62, %v632_v4  ;;  %v181_v7 = vstv %s682_s1  ;;  %s759_s5 = sld [smem:[#allocation7 + $0x16]]  ;;  %s761_s6 = sld [smem:[#allocation7 + $0x17]] }
  0x51   :  { %v164_v8 = vadd.f32 %v163_v60, %v161_v35  ;;  %v182_v9 = vmul.f32 %v181_v7, %v620_v2  ;;  %v184_v10 = vstv %s684_s3  ;;  %v187_v11 = vstv %s688_s15  ;;  %s764_s7 = sld [smem:[#allocation9 + $0x8]]  ;;  %s771_s10 = sld [smem:[#allocation6 + $0x11]] }
  0x52   :  { %v148_v12 = vadd.f32 %v147_v56, %v145_v63  ;;  %v185_v15 = vmul.f32 %v184_v10, %v628_v3  ;;  %v188_v16 = vmul.f32 %v187_v11, %v632_v4  ;;  %v200_v17 = vstv %s690_s16  ;;  %s766_s8 = sld [smem:[#allocation6 + $0x10]]  ;;  %s781_s12 = sld [smem:[#allocation7 + $0x19]] }
  0x53   :  { %v167_v18 = vadd.f32 %v166_v5, %v164_v8  ;;  %v183_v19 = vadd.f32 %v182_v9, %v180_v39  ;;  %v201_v20 = vmul.f32 %v200_v17, %v620_v2  ;;  %v203_v21 = vstv %s695_s17  ;;  %s773_s11 = sld [smem:[#allocation7 + $0x18]]  ;;  %s786_s13 = sld [smem:[#allocation6 + $0x12]] }
  0x54   :  { %v151_v22 = vadd.f32 %v150_v59, %v148_v12  ;;  %v204_v23 = vmul.f32 %v203_v21, %v628_v3  ;;  %v206_v24 = vstv %s697_s18  ;;  %v219_v25 = vstv %s703_s19  ;;  %s790_s20 = sld [smem:[#allocation6 + $0x13]]  ;;  %s792_s14 = sld [smem:[#allocation7 + $0x1a]] }
  0x55   :  { %v170_v26 = vadd.f32 %v169_v6, %v167_v18  ;;  %v186_v27 = vadd.f32 %v185_v15, %v183_v19  ;;  %v202_v28 = vadd.f32 %v201_v20, %v199_v43  ;;  %v207_v29 = vmul.f32 %v206_v24, %v632_v4  ;;  %s800_s0 = sld [smem:[#allocation9 + $0x9]]  ;;  %s803_s1 = sld [smem:[#allocation7 + $0x1b]] }
  0x56   :  { %v152_v30 = vmul.f32 1.442695, %v151_v22  ;;  %v220_v31 = vmul.f32 %v219_v25, %v620_v2  ;;  %v222_v32 = vstv %s711_s22  ;;  %v225_v33 = vstv %s713_s23  ;;  %s810_s9 = sld [smem:[#allocation7 + $0x1c]]  ;;  %s817_s21 = sld [smem:[#allocation7 + $0x1d]] }
  0x57   :  { %v171_v34 = vmul.f32 1.442695, %v170_v26  ;;  %v189_v35 = vadd.f32 %v188_v16, %v186_v27  ;;  %v205_v36 = vadd.f32 %v204_v23, %v202_v28  ;;  %v223_v37 = vmul.f32 %v222_v32, %v628_v3  ;;  %s539_s3 = smov [#allocation10]  }
  0x58   :  { %423 = vpow2.f32 %v152_v30  ;;  %v221_v38 = vadd.f32 %v220_v31, %v218_v47  ;;  %v226_v39 = vmul.f32 %v225_v33, %v632_v4  ;;  %v237_v40 = vadd.f32 %v236_v49, %v234_v48  ;;  %s347_s15 = sshll.u32 %s539_s3, 4  ;;  %s348_s15 = int_to_ptr.vmem [resolvable:$true] %s347_s15 }
  0x59   :  { %425 = vpow2.f32 %v171_v34  ;;  %v190_v41 = vmul.f32 1.442695, %v189_v35  ;;  %v208_v42 = vadd.f32 %v207_v29, %v205_v36  ;;  %v238_v43 = vstv %s726_s24  ;;  %s503_s16 = scalar_lea.vmem %s348_s15, 128  ;;  %p508_p10 = scmp.lt.s32.totalorder %s348_s15, %s348_s15 }
  0x5a   :  { %v224_v44 = vadd.f32 %v223_v37, %v221_v38  ;;  %v239_v45 = vmul.f32 %v238_v43, %v620_v2  ;;  %v241_v46 = vstv %s731_s25  ;;  %v244_v47 = vstv %s733_s2  ;;  %p504_p9 = scmp.ne.s32.totalorder %s348_s15, %s503_s16  ;;  %p509_p11 = scmp.lt.s32.totalorder %s503_s16, %s503_s16 }
  0x5b   :  { %427 = vpow2.f32 %v190_v41  ;;  %v209_v48 = vmul.f32 1.442695, %v208_v42  ;;  %v242_v49 = vmul.f32 %v241_v46, %v628_v3  ;;  %v245_v51 = vmul.f32 %v244_v47, %v632_v4 }
  0x5c   :  { %v227_v52 = vadd.f32 %v226_v39, %v224_v44  ;;  %v240_v55 = vadd.f32 %v239_v45, %v237_v40  ;;  %v253_v56 = vadd.f32 %v252_v13, %v701_v50  ;;  %v257_v57 = vstv %s740_s26  ;;  %p510_p12 = por %p509_p11, %p508_p10 }
  0x5d   :  { %429 = vpow2.f32 %v209_v48  ;;  %v258_v58 = vmul.f32 %v257_v57, %v620_v2  ;;  %v260_v59 = vstv %s745_s27  ;;  %v263_v60 = vstv %s747_s28 }
  0x5e   :  { %v228_v61 = vmul.f32 1.442695, %v227_v52  ;;  %v243_v62 = vadd.f32 %v242_v49, %v240_v55  ;;  %v256_v63 = vadd.f32 %v708_v53, %v253_v56  ;;  %v261_v13 = vmul.f32 %v260_v59, %v628_v3  ;;  %p511_p13 = pnand %p510_p12, %p504_p9 }
  0x5f   :  { %v264_v50 = vmul.f32 %v263_v60, %v632_v4  ;;  %v270_v5 = vmul.f32 %v269_v54, %v610_v0  ;;  %v273_v6 = vstv %s753_s29  ;;  %v276_v7 = vstv %s755_s30 }
  0x60   :  { %431 = vpow2.f32 %v228_v61  ;;  %v246_v53 = vadd.f32 %v245_v51, %v243_v62  ;;  %v259_v8 = vadd.f32 %v258_v58, %v256_v63  ;;  %v274_v9 = vmul.f32 %v273_v6, %v616_v1 }
  0x61   :  { %v272_v10 = vadd.f32 %v271_v14, %v270_v5  ;;  %v277_v11 = vmul.f32 %v276_v7, %v620_v2  ;;  %v279_v54 = vstv %s759_s5  ;;  %v282_v12 = vstv %s761_s6 }
  0x62   :  { %v424_v15 = vpop.eup %423  ;;  %v247_v16 = vmul.f32 1.442695, %v246_v53  ;;  %v262_v17 = vadd.f32 %v261_v13, %v259_v8  ;;  %v280_v18 = vmul.f32 %v279_v54, %v628_v3  ;;  %v290_v19 = vstv %s764_s7 }
  0x63   :  { %v426_v20 = vpop.eup %425  ;;  %v275_v21 = vadd.f32 %v274_v9, %v272_v10  ;;  %v288_v22 = vstv %s766_s8  ;;  %v292_v23 = vstv %s771_s10  ;;  %v295_v24 = vstv %s773_s11 }
  0x64   :  { %v173_v14 = vadd.f32 %v426_v20, %v424_v15  ;;  %v265_v25 = vadd.f32 %v264_v50, %v262_v17  ;;  %v283_v26 = vmul.f32 %v282_v12, %v632_v4  ;;  %v289_v27 = vmul.f32 %v288_v22, %v610_v0 }
  0x65   :  { %v428_v28 = vpop.eup %427  ;;  %433 = vpow2.f32 %v247_v16  ;;  %v278_v29 = vadd.f32 %v277_v11, %v275_v21  ;;  %v293_v30 = vmul.f32 %v292_v23, %v616_v1  ;;  %v298_v31 = vstv %s781_s12 }
  0x66   :  { %v192_v32 = vadd.f32 %v428_v28, %v173_v14  ;;  %v266_v33 = vmul.f32 1.442695, %v265_v25  ;;  %v291_v34 = vadd.f32 %v290_v19, %v289_v27  ;;  %v296_v35 = vmul.f32 %v295_v24, %v620_v2 }
  0x67   :  { %v430_v36 = vpop.eup %429  ;;  %v281_v37 = vadd.f32 %v280_v18, %v278_v29  ;;  %v301_v38 = vstv %s792_s14  ;;  %v307_v39 = vstv %s786_s13  ;;  %v311_v40 = vstv %s790_s20 }
  0x68   :  { %435 = vpow2.f32 %v266_v33  ;;  %v294_v41 = vadd.f32 %v293_v30, %v291_v34  ;;  %v299_v42 = vmul.f32 %v298_v31, %v628_v3  ;;  %v309_v43 = vstv %s800_s0 }
  0x69   :  { %v284_v44 = vadd.f32 %v283_v26, %v281_v37  ;;  %v308_v45 = vmul.f32 %v307_v39, %v610_v0  ;;  %v312_v46 = vmul.f32 %v311_v40, %v616_v1  ;;  %v314_v47 = vstv %s803_s1 }
  0x6a   :  { %v432_v48 = vpop.eup %431  ;;  %v211_v49 = vadd.f32 %v430_v36, %v192_v32  ;;  %v297_v51 = vadd.f32 %v296_v35, %v294_v41  ;;  %v302_v52 = vmul.f32 %v301_v38, %v632_v4  ;;  %v317_v55 = vstv %s810_s9 }
  0x6b   :  { %v285_v56 = vmul.f32 1.442695, %v284_v44  ;;  %v310_v57 = vadd.f32 %v309_v43, %v308_v45  ;;  %v315_v58 = vmul.f32 %v314_v47, %v620_v2  ;;  %v320_v60 = vstv %s817_s21 }
  0x6c   :  { %v300_v59 = vadd.f32 %v299_v42, %v297_v51  ;;  %v318_v62 = vmul.f32 %v317_v55, %v628_v3  ;;  %v230_v0 = vadd.f32 %v432_v48, %v211_v49  ;;  %v321_v50 = vmul.f32 %v320_v60, %v632_v4 }
  0x6d   :  { %437 = vpow2.f32 %v285_v56  ;;  %v313_v61 = vadd.f32 %v312_v46, %v310_v57  ;;  %v328_v3 = vlaneseq }
  0x6e   :  { %v303_v63 = vadd.f32 %v302_v52, %v300_v59 }
  0x6f   :  { %v434_v1 = vpop.eup %433  ;;  %v316_v13 = vadd.f32 %v315_v58, %v313_v61  ;;  %v329_v17 = vshrl.u32 %v328_v3, 7  ;;  %v334_v18 = vand.u32 127, %v328_v3 }
  0x70   :  { %v304_v5 = vmul.f32 1.442695, %v303_v63  ;;  %v249_v53 = vadd.f32 %v434_v1, %v230_v0 }
  0x71   :  { %v319_v6 = vadd.f32 %v318_v62, %v316_v13  ;;  %v335_v4 = vmul.u32 128, %v329_v17 }
  0x72   :  { %v436_v7 = vpop.eup %435  ;;  %439 = vpow2.f32 %v304_v5 }
  0x73   :  { %v322_v8 = vadd.f32 %v321_v50, %v319_v6  ;;  %v268_v2 = vadd.f32 %v436_v7, %v249_v53  ;;  %v336_v19 = vadd.s32 %v335_v4, %v334_v18 }
  0x75   :  { %v323_v9 = vmul.f32 1.442695, %v322_v8  ;;  %vm337_vm0 = vcmp.lt.s32.totalorder %v336_v19, 1000 }
  0x77   :  { %v438_v10 = vpop.eup %437  ;;  %441 = vpow2.f32 %v323_v9 }
  0x78   :  { %v287_v11 = vadd.f32 %v438_v10, %v268_v2 }
  0x7c   :  { %v440_v54 = vpop.eup %439 }
  0x7d   :  { %v306_v12 = vadd.f32 %v440_v54, %v287_v11 }
  0x81   :  { %v442_v15 = vpop.eup %441 }
  0x82   :  { %v325_v16 = vadd.f32 %v442_v15, %v306_v12 }
  0x84   :  { %443 = vlog2.f32 %v325_v16 }
  0x8e   :  { %v444_v20 = vpop.eup %443 }
  0x8f   :  { %v327_v21 = vmul.f32 0.6931472, %v444_v20 }
  0x91   :  { %v338_v22 = vsel %vm337_vm0, %v327_v21, 0.0 }
  0x92   :  { %340 = vst [vmem:[#allocation10] sm:$0xff] %v338_v22 }
  0x93   :  { %514 = shalt.err (!%p511_p13)
}
  0x94   :  { %s515_s19 = scalar_lea.hbm %s854_s4, 128 }
  0x95   :  { %p516_p0 = scmp.ne.s32.totalorder %s854_s4, %s515_s19  ;;  %p519_p1 = scmp.lt.u32.totalorder %s515_s19, %s854_s4 }
  0x97   :  { %p521_p2 = pnand %p519_p1, %p516_p0 }
  0x99   :  { %524 = shalt.err (!%p521_p2)
}
  0x9a   :  { %350 = dma.vmem_to_hbm [thread:$0]  %s348_s15, 128, %s854_s4, [#allocation4]  }
  0x9b   :  { %531 = dma.done.wait [#allocation4], 128  }
  0x9c   :  { %532 = vsyncadd [#allocation4], 4294967168 }
  0x9d   :  { %354 = vsyncpa [#allocation3], 1 }
  0x9e   :  { %355 = vsyncpa [#allocation4], 1 }
  0x9f   :  { %356 = vsyncpa [#allocation5], 1 }
  0xa0   :  { %357 = vsyncpa [#allocation8], 1 }

</bundles_post_ra>
